<compile_context>
chip_gen: v7x
topology: tpu7x:2x2x1
jax: 0.10.0
libtpu: 0.0.40
codegen_flags: <defaults>
</compile_context>

<pallas_src>
import jax
import jax.numpy as jnp
from jax.experimental import pallas as pl
from jax.experimental.pallas import tpu as pltpu


# ----------------------------------------------------------------------------
# Hardware-aware configuration
# ----------------------------------------------------------------------------
def _vmem_limit_bytes():
    """Per-generation VMEM limit: ~112 MiB on 128-MiB chips (v5e/v6e),
    ~56 MiB on v7x (64 MiB physical)."""
    default_cap = 64 * 1024 * 1024
    try:
        cap = getattr(pltpu.get_tpu_info(), "vmem_capacity_bytes", default_cap)
    except Exception:  # fallback if the query is unavailable
        cap = default_cap
    return max(32 * 1024 * 1024, min(cap - 8 * 1024 * 1024, 112 * 1024 * 1024))


def _select_tiles(B, K, D, T, vmem_limit):
    """Choose (tb, tk, Kp): batch tile, K tile, zero-padded K."""
    # Batch tile: prefer >=2 grid steps (so the "parallel" batch axis actually
    # shards across v7x's two TensorCores) with multiple-of-128 tiles (lane-
    # dense (1, tb) argmax store); otherwise fall back to the full batch.
    tb = B
    for cand in (1024, 512, 256, 128):
        if B % cand == 0 and B // cand >= 2:
            tb = cand
            break
    else:
        for cand in (1024, 512, 256, 128):
            if B % cand == 0:
                tb = cand
                break

    # K tile: largest multiple of 128 whose double-buffered working set
    # (f32 image tile + bf16 weight tile) fits the VMEM budget.  Bigger tk
    # => fewer grid steps on the dominant w_img HBM stream (mem-bound regime).
    budget = int(vmem_limit * 0.75)
    fixed = 2 * (T * D * 4) + 2 * (tb * D * 4) + 2 * (tb * 4)
    tk = 128
    for cand in (8192, 4096, 2048, 1024, 512, 256, 128):
        per_k = 2 * (tb * cand * 4) + 2 * (cand * D * 2)
        if fixed + per_k <= budget:
            tk = cand
            break

    k128 = ((K + 127) // 128) * 128
    tk = min(tk, k128)
    Kp = ((K + tk - 1) // tk) * tk
    return tb, tk, Kp


# ----------------------------------------------------------------------------
# Fused kernel: image projection (K-tiled) + similarity + argmax
# ----------------------------------------------------------------------------
def _image_classify_kernel(txt_emb_ref, img_ref, w_img_ref,
                           result_ref, img_emb_ref):
    k = pl.program_id(1)

    # bf16 MXU operands (image features cast on the VPU in-kernel), f32 acc.
    prod = jnp.dot(img_ref[...].astype(jnp.bfloat16), w_img_ref[...],
                   preferred_element_type=jnp.float32)

    # Accumulate directly into the resident f32 output block (no scratch).
    @pl.when(k == 0)
    def _():
        img_emb_ref[...] = prod

    @pl.when(k > 0)
    def _():
        img_emb_ref[...] += prod

    @pl.when(k == pl.num_programs(1) - 1)
    def _():
        img_emb = img_emb_ref[...]                                # (tb, D) f32
        # sim.T = text_embeds @ image_embeds.T via contraction dims (no XLU
        # transpose); f32 end-to-end so argmax ties match the f32 reference.
        sim_t = jax.lax.dot_general(
            txt_emb_ref[...], img_emb,
            dimension_numbers=(((1,), (1,)), ((), ())),
            preferred_element_type=jnp.float32)                   # (T, tb)
        # argmax over T classes, first occurrence on ties (torch.argmax).
        col_max = jnp.max(sim_t, axis=0, keepdims=True)           # (1, tb)
        cls_idx = jax.lax.broadcasted_iota(jnp.int32, sim_t.shape, 0)
        masked = jnp.where(sim_t == col_max, cls_idx,
                           jnp.iinfo(jnp.int32).max)
        # lane-dense (1, tb) int32 store: batch runs along the lane axis.
        result_ref[...] = jnp.min(masked, axis=0, keepdims=True)


def _image_project_and_classify(img_f32, w_img_bf16, text_embeds_f32):
    """image_embeds = img @ W_img; sim = image_embeds @ text_embeds.T; argmax."""
    B, K = img_f32.shape
    D = w_img_bf16.shape[1]
    T = text_embeds_f32.shape[0]

    vmem_limit = _vmem_limit_bytes()
    tb, tk, Kp = _select_tiles(B, K, D, T, vmem_limit)

    if Kp != K:  # zero-pad the contraction dim (zero contribution to the dot)
        img_f32 = jnp.pad(img_f32, ((0, 0), (0, Kp - K)))
        w_img_bf16 = jnp.pad(w_img_bf16, ((0, Kp - K), (0, 0)))

    grid = (B // tb, Kp // tk)

    cost = pl.CostEstimate(
        flops=2 * B * Kp * D + 2 * B * T * D,
        transcendentals=0,
        bytes_accessed=(B * Kp * 4            # image features (f32 in)
                        + grid[0] * Kp * D * 2  # w_img bf16, streamed per batch tile
                        + T * D * 4 + B * D * 4 + B * 4))

    result2d, image_embeds = pl.pallas_call(
        _image_classify_kernel,
        out_shape=(
            jax.ShapeDtypeStruct((1, B), jnp.int32),       # lane-dense argmax
            jax.ShapeDtypeStruct((B, D), jnp.float32),     # image embeds / acc
        ),
        grid_spec=pltpu.PrefetchScalarGridSpec(
            num_scalar_prefetch=0,
            grid=grid,
            in_specs=[
                pl.BlockSpec((T, D), lambda b, k: (0, 0)),     # text embeds (resident)
                pl.BlockSpec((tb, tk), lambda b, k: (b, k)),   # image features (f32)
                pl.BlockSpec((tk, D), lambda b, k: (k, 0)),    # image projection weight
            ],
            out_specs=(
                pl.BlockSpec((1, tb), lambda b, k: (0, b)),
                pl.BlockSpec((tb, D), lambda b, k: (b, 0)),
            ),
        ),
        compiler_params=pltpu.CompilerParams(
            dimension_semantics=("parallel", "arbitrary"),
            vmem_limit_bytes=vmem_limit),
        cost_estimate=cost,
    )(text_embeds_f32, img_f32, w_img_bf16)

    return result2d[0], image_embeds


# ----------------------------------------------------------------------------
# Forward pass (matches the PyTorch module contract)
# ----------------------------------------------------------------------------
def fashion_classification_forward(images, token_ids, params):
    """Synthetic CLIP classification forward.

    images:    [B, C, H, W] float (NCHW, PyTorch convention)
    token_ids: [T, S] int32 token ids for the T text prompts
    returns (result[B] int32, image_embeds[B, D] f32, text_embeds[T, D] f32)
    (torch.argmax returns int64; int32 is emitted on TPU.)
    """
    B = images.shape[0]
    # image "processor": flatten NCHW row-major; kept f32 (the bf16 cast
    # happens on the VPU inside the kernel -> no extra HBM round trip).
    img_flat = images.reshape(B, -1)                             # [B, C*H*W]

    # text "processor" + text tower: embedding lookup, mean pool, projection.
    # T (~a handful of prompts) x E x D is too small to justify its own
    # pallas_call; it stays in plain JAX, f32 end-to-end.
    tok_emb = params["token_embedding"][token_ids]               # [T, S, E]
    txt_pooled = tok_emb.mean(axis=1)                            # [T, E]
    text_embeds = jnp.dot(txt_pooled, params["w_txt"],
                          preferred_element_type=jnp.float32)    # [T, D]

    # image_embeds = img_flat @ W_img ; sim = image_embeds @ text_embeds.T ;
    # result = argmax(sim, dim=1)   (single fused Pallas kernel)
    result, image_embeds = _image_project_and_classify(
        img_flat, params["w_img"], text_embeds)

    # TODO(synk): real CLIP L2-normalizes + applies logit_scale inside
    # CLIPModel.forward; the reference module uses raw get_*_features outputs,
    # so the un-normalized dot product is kept to match its semantics.
    return result, image_embeds, text_embeds


def init_params(key, *, feat_dim, embed_dim, token_dim, vocab_size):
    k1, k2, k3 = jax.random.split(key, 3)
    return {
        # Image projection weight stored bf16: MXU-native operand dtype; halves
        # the dominant HBM->VMEM w_img stream.
        "w_img": (jax.random.normal(k1, (feat_dim, embed_dim), jnp.float32)
                  * 0.02).astype(jnp.bfloat16),
        # Text-side weights stay f32 (tiny; keeps the argmax logits f32).
        "w_txt": jax.random.normal(k2, (token_dim, embed_dim), jnp.float32) * 0.02,
        "token_embedding": jax.random.normal(
            k3, (vocab_size, token_dim), jnp.float32) * 0.02,
    }


if __name__ == "__main__":
    # Small shapes consistent with the forward pass.
    B, C, H, W = 8, 3, 16, 16        # batch of images, NCHW
    T, S = 8, 8                      # number of text prompts, seq length
    V, E, D = 32, 128, 128           # vocab, token dim, CLIP embed dim

    key = jax.random.PRNGKey(0)
    k_img, k_tok, k_par = jax.random.split(key, 3)

    images = jax.random.normal(k_img, (B, C, H, W), jnp.float32)
    token_ids = jax.random.randint(k_tok, (T, S), 0, V, jnp.int32)
    params = init_params(k_par, feat_dim=C * H * W, embed_dim=D,
                         token_dim=E, vocab_size=V)

    fwd = jax.jit(fashion_classification_forward)
    result, image_embeds, text_embeds = fwd(images, token_ids, params)
    jax.block_until_ready((result, image_embeds, text_embeds))

    # contract checks (shapes/dtypes match the PyTorch forward contract)
    assert result.shape == (B,) and result.dtype == jnp.int32
    assert image_embeds.shape == (B, D) and image_embeds.dtype == jnp.float32
    assert text_embeds.shape == (T, D) and text_embeds.dtype == jnp.float32
    assert bool(jnp.all((result >= 0) & (result < T)))

    # numeric sanity vs. plain-JAX reference on the same bf16 MXU operands
    ref_img = jnp.dot(images.reshape(B, -1).astype(jnp.bfloat16).astype(jnp.float32),
                      params["w_img"].astype(jnp.float32))
    ref_txt = jnp.dot(params["token_embedding"][token_ids].mean(axis=1),
                      params["w_txt"])
    ref_res = jnp.argmax(jnp.dot(ref_img, ref_txt.T), axis=1).astype(jnp.int32)
    assert jnp.allclose(image_embeds, ref_img, rtol=2e-2, atol=1e-3)
    assert jnp.allclose(text_embeds, ref_txt, rtol=2e-2, atol=1e-3)
    assert bool(jnp.all(result == ref_res))

    print("KERNEL_OK")
</pallas_src>

<mosaic_0001>
module attributes {stable_mosaic.version = 11 : i64} {
  func.func @_image_classify_kernel(%arg0: i32, %arg1: i32, %arg2: memref<8x128xf32, #tpu.memory_space<vmem>>, %arg3: memref<8x768xf32, #tpu.memory_space<vmem>>, %arg4: memref<768x128xbf16, #tpu.memory_space<vmem>>, %arg5: memref<1x8xi32, #tpu.memory_space<vmem>>, %arg6: memref<8x128xf32, #tpu.memory_space<vmem>>) attributes {dimension_semantics = [#tpu.dimension_semantics<parallel>, #tpu.dimension_semantics<arbitrary>], iteration_bounds = array<i64: 1, 1>, scalar_prefetch = 0 : i64, scratch_operands = 0 : i64, tpu.core_type = #tpu.core_type<tc>, window_params = [{pipeline_mode = #tpu.pipeline_mode<synchronous>, transform_indices = @transform_0, window_bounds = array<i64: 8, 128>}, {transform_indices = @transform_1, window_bounds = array<i64: 8, 768>}, {transform_indices = @transform_2, window_bounds = array<i64: 768, 128>}, {transform_indices = @transform_3, window_bounds = array<i64: 1, 8>}, {transform_indices = @transform_4, window_bounds = array<i64: 8, 128>}]} {
    %c0 = arith.constant 0 : index
    %c0_0 = arith.constant 0 : index
    %0 = vector.load %arg3[%c0, %c0_0] : memref<8x768xf32, #tpu.memory_space<vmem>>, vector<8x768xf32>
    %1 = arith.truncf %0 : vector<8x768xf32> to vector<8x768xbf16>
    %c0_1 = arith.constant 0 : index
    %c0_2 = arith.constant 0 : index
    %2 = vector.load %arg4[%c0_1, %c0_2] : memref<768x128xbf16, #tpu.memory_space<vmem>>, vector<768x128xbf16>
    %cst = arith.constant dense<0.000000e+00> : vector<8x128xf32>
    %3 = tpu.matmul %1, %2, %cst {dimension_numbers = #tpu.dot_dimension_numbers<[1], [0], [0], [1], [0, 0, 1, 1], [], []>} : vector<8x768xbf16>, vector<768x128xbf16>, vector<8x128xf32> -> vector<8x128xf32>
    %c0_i32 = arith.constant 0 : i32
    %4 = arith.cmpi eq, %arg1, %c0_i32 : i32
    %5 = arith.extui %4 : i1 to i32
    %c0_i32_3 = arith.constant 0 : i32
    %6 = arith.cmpi ne, %5, %c0_i32_3 : i32
    scf.if %6 {
      %c0_8 = arith.constant 0 : index
      %c0_9 = arith.constant 0 : index
      %13 = vector.load %arg6[%c0_8, %c0_9] : memref<8x128xf32, #tpu.memory_space<vmem>>, vector<8x128xf32>
      tpu.vector_store %arg6[%c0_8, %c0_9], %3 {strides = array<i32>} : memref<8x128xf32, #tpu.memory_space<vmem>>, vector<8x128xf32>,
    } else {
    }
    %c0_i32_4 = arith.constant 0 : i32
    %7 = arith.cmpi sgt, %arg1, %c0_i32_4 : i32
    %8 = arith.extui %7 : i1 to i32
    %c0_i32_5 = arith.constant 0 : i32
    %9 = arith.cmpi ne, %8, %c0_i32_5 : i32
    scf.if %9 {
      %c0_8 = arith.constant 0 : index
      %c0_9 = arith.constant 0 : index
      %13 = vector.load %arg6[%c0_8, %c0_9] : memref<8x128xf32, #tpu.memory_space<vmem>>, vector<8x128xf32>
      %14 = arith.addf %13, %3 : vector<8x128xf32>
      %c0_10 = arith.constant 0 : index
      %c0_11 = arith.constant 0 : index
      %15 = vector.load %arg6[%c0_10, %c0_11] : memref<8x128xf32, #tpu.memory_space<vmem>>, vector<8x128xf32>
      tpu.vector_store %arg6[%c0_10, %c0_11], %14 {strides = array<i32>} : memref<8x128xf32, #tpu.memory_space<vmem>>, vector<8x128xf32>,
    } else {
    }
    %c0_i32_6 = arith.constant 0 : i32
    %10 = arith.cmpi eq, %arg1, %c0_i32_6 : i32
    %11 = arith.extui %10 : i1 to i32
    %c0_i32_7 = arith.constant 0 : i32
    %12 = arith.cmpi ne, %11, %c0_i32_7 : i32
    scf.if %12 {
      %c0_8 = arith.constant 0 : index
      %c0_9 = arith.constant 0 : index
      %13 = vector.load %arg6[%c0_8, %c0_9] : memref<8x128xf32, #tpu.memory_space<vmem>>, vector<8x128xf32>
      %c0_10 = arith.constant 0 : index
      %c0_11 = arith.constant 0 : index
      %14 = vector.load %arg2[%c0_10, %c0_11] : memref<8x128xf32, #tpu.memory_space<vmem>>, vector<8x128xf32>
      %cst_12 = arith.constant dense<0.000000e+00> : vector<8x8xf32>
      %15 = tpu.matmul %14, %13, %cst_12 {dimension_numbers = #tpu.dot_dimension_numbers<[1], [1], [0], [0], [0, 0, 1, 0], [], []>} : vector<8x128xf32>, vector<8x128xf32>, vector<8x8xf32> -> vector<8x8xf32>
      %cst_13 = arith.constant dense<0xFF800000> : vector<8xf32>
      %16 = vector.multi_reduction <maximumf>, %15, %cst_13 [0] : vector<8x8xf32> to vector<8xf32>
      %17 = vector.shape_cast %16 : vector<8xf32> to vector<1x8xf32>
      %18 = tpu.iota {dimensions = array<i32: 0>} : vector<8x8xi32>
      %19 = vector.broadcast %17 : vector<1x8xf32> to vector<8x8xf32>
      %20 = arith.cmpf oeq, %15, %19 : vector<8x8xf32>
      %c2147483647_i32 = arith.constant 2147483647 : i32
      %21 = vector.broadcast %c2147483647_i32 : i32 to vector<8x8xi32>
      %22 = arith.select %20, %18, %21 : vector<8x8xi1>, vector<8x8xi32>
      %cst_14 = arith.constant dense<2147483647> : vector<8xi32>
      %23 = vector.multi_reduction <minsi>, %22, %cst_14 [0] : vector<8x8xi32> to vector<8xi32>
      %24 = vector.shape_cast %23 : vector<8xi32> to vector<1x8xi32>
      %c0_15 = arith.constant 0 : index
      %c0_16 = arith.constant 0 : index
      %25 = vector.load %arg5[%c0_15, %c0_16] : memref<1x8xi32, #tpu.memory_space<vmem>>, vector<1x8xi32>
      tpu.vector_store %arg5[%c0_15, %c0_16], %24 {strides = array<i32>} : memref<1x8xi32, #tpu.memory_space<vmem>>, vector<1x8xi32>,
    } else {
    }
    return
  }
  func.func @transform_0(%arg0: i32, %arg1: i32) -> (i32, i32) {
    %c0_i32 = arith.constant 0 : i32
    %c0_i32_0 = arith.constant 0 : i32
    %c0_i32_1 = arith.constant 0 : i32
    return %c0_i32, %c0_i32_0 : i32, i32
  }
  func.func @transform_1(%arg0: i32, %arg1: i32) -> (i32, i32) {
    %c0_i32 = arith.constant 0 : i32
    return %arg0, %arg1 : i32, i32
  }
  func.func @transform_2(%arg0: i32, %arg1: i32) -> (i32, i32) {
    %c0_i32 = arith.constant 0 : i32
    %c0_i32_0 = arith.constant 0 : i32
    return %arg1, %c0_i32 : i32, i32
  }
  func.func @transform_3(%arg0: i32, %arg1: i32) -> (i32, i32) {
    %c0_i32 = arith.constant 0 : i32
    %c0_i32_0 = arith.constant 0 : i32
    return %c0_i32, %arg0 : i32, i32
  }
  func.func @transform_4(%arg0: i32, %arg1: i32) -> (i32, i32) {
    %c0_i32 = arith.constant 0 : i32
    %c0_i32_0 = arith.constant 0 : i32
    return %arg0, %c0_i32 : i32, i32
  }
}

</mosaic_0001>

<bundles_post_ra>
// kernel: fashion_classification_forward.1
= control target key start
LH: loop header
LB: loop body
LE: loop exit
PB: predicated region body
PF: predicated region fallthrough
CT: control target
= control target key end

     0   :  { %10 = vsyncpa [#allocation3], 0  ;;  %s1113_s0 = inlined_call_operand.vmem [shape: f32[8,128], index: 0, kind: input, shape index: {}]   ;;  %s1114_s1 = inlined_call_operand.vmem [shape: f32[8,768], index: 1, kind: input, shape index: {}]   ;;  %s1115_s2 = inlined_call_operand.vmem [shape: bf16[768,128], index: 2, kind: input, shape index: {}]   ;;  %s1116_s3 = inlined_call_operand.hbm [shape: s32[1,8], index: 3, kind: output, shape index: {0}]   ;;  %s1117_s4 = inlined_call_operand.hbm [shape: f32[8,128], index: 4, kind: output, shape index: {1}]  }
   0x1   :  { %v799_v0 = vld [vmem:[%s1115_s2 + $0x40] sm:$0xff]   ;;  %v803_v4 = vld [vmem:[%s1115_s2 + $0x48] sm:$0xff]   ;;  %v807_v8 = vld [vmem:[%s1115_s2 + $0x50] sm:$0xff]  }
   0x2   :  { %v800_v1 = vld [vmem:[%s1115_s2 + $0xc0] sm:$0xff]   ;;  %722 = vmatprep.subr.bf16.mxu0 %v799_v0  ;;  %v804_v5 = vld [vmem:[%s1115_s2 + $0xc8] sm:$0xff]   ;;  %v808_v9 = vld [vmem:[%s1115_s2 + $0xd0] sm:$0xff]  }
   0x3   :  { %v801_v2 = vld [vmem:[%s1115_s2] sm:$0xff]   ;;  %744 = vmatprep.subr.bf16.mxu1 %v800_v1  ;;  %v805_v6 = vld [vmem:[%s1115_s2 + $0x8] sm:$0xff]   ;;  %v809_v10 = vld [vmem:[%s1115_s2 + $0x10] sm:$0xff]  }
   0x4   :  { %v802_v3 = vld [vmem:[%s1115_s2 + $0x80] sm:$0xff]   ;;  %723 = vmatpush3.bf16.msra.mxu0 %v801_v2  ;;  %v806_v7 = vld [vmem:[%s1115_s2 + $0x88] sm:$0xff]   ;;  %v810_v11 = vld [vmem:[%s1115_s2 + $0x90] sm:$0xff]  }
   0x5   :  { %745 = vmatpush3.bf16.msra.mxu1 %v802_v3  ;;  %724 = vmatprep.subr.bf16.mxu0 %v803_v4  ;;  %v811_v12 = vld [vmem:[%s1115_s2 + $0x58] sm:$0xff]   ;;  %v815_v16 = vld [vmem:[%s1115_s2 + $0x60] sm:$0xff]   ;;  %v819_v20 = vld [vmem:[%s1115_s2 + $0x68] sm:$0xff]  }
   0x6   :  { %746 = vmatprep.subr.bf16.mxu1 %v804_v5  ;;  %v812_v13 = vld [vmem:[%s1115_s2 + $0xd8] sm:$0xff]   ;;  %v816_v17 = vld [vmem:[%s1115_s2 + $0xe0] sm:$0xff]   ;;  %v820_v21 = vld [vmem:[%s1115_s2 + $0xe8] sm:$0xff]  }
   0x7   :  { %v813_v14 = vld [vmem:[%s1115_s2 + $0x18] sm:$0xff]   ;;  %v817_v18 = vld [vmem:[%s1115_s2 + $0x20] sm:$0xff]   ;;  %v821_v22 = vld [vmem:[%s1115_s2 + $0x28] sm:$0xff]  }
   0x8   :  { %725 = vmatpush3.bf16.msra.mxu0 %v805_v6  ;;  %v814_v15 = vld [vmem:[%s1115_s2 + $0x98] sm:$0xff]   ;;  %v818_v19 = vld [vmem:[%s1115_s2 + $0xa0] sm:$0xff]   ;;  %v822_v23 = vld [vmem:[%s1115_s2 + $0xa8] sm:$0xff]  }
   0x9   :  { %747 = vmatpush3.bf16.msra.mxu1 %v806_v7  ;;  %726 = vmatprep.subr.bf16.mxu0 %v807_v8  ;;  %v823_v24 = vld [vmem:[%s1115_s2 + $0x70] sm:$0xff]   ;;  %v827_v28 = vld [vmem:[%s1115_s2 + $0x78] sm:$0xff]   ;;  %v20_v32 = vld [vmem:[%s1114_s1 + $0x8] sm:$0xff] }
   0xa   :  { %748 = vmatprep.subr.bf16.mxu1 %v808_v9  ;;  %v824_v25 = vld [vmem:[%s1115_s2 + $0xf0] sm:$0xff]   ;;  %v828_v29 = vld [vmem:[%s1115_s2 + $0xf8] sm:$0xff]   ;;  %v19_v34 = vld [vmem:[%s1114_s1] sm:$0xff]  ;;  %v26_v35 = vpack.c.bf16 %v20_v32, %v20_v32 }
   0xb   :  { %v825_v26 = vld [vmem:[%s1115_s2 + $0x30] sm:$0xff]   ;;  %v829_v30 = vld [vmem:[%s1115_s2 + $0x38] sm:$0xff]   ;;  %v25_v37 = vpack.c.bf16 %v19_v34, %v19_v34  ;;  %v831_v40 = vld [vmem:[%s1115_s2 + $0x140] sm:$0xff]  }
   0xc   :  { %727 = vmatpush3.bf16.msra.mxu0 %v809_v10  ;;  %v826_v27 = vld [vmem:[%s1115_s2 + $0xb0] sm:$0xff]   ;;  %v830_v31 = vld [vmem:[%s1115_s2 + $0xb8] sm:$0xff]   ;;  %447 = vmatprep.mubr.bf16.mxu0 %v26_v35  ;;  %v832_v41 = vld [vmem:[%s1115_s2 + $0x100] sm:$0xff]  }
   0xd   :  { %749 = vmatpush3.bf16.msra.mxu1 %v810_v11  ;;  %728 = vmatprep.subr.bf16.mxu0 %v811_v12  ;;  %v22_v33 = vld [vmem:[%s1114_s1 + $0x18] sm:$0xff]  ;;  %v21_v38 = vld [vmem:[%s1114_s1 + $0x10] sm:$0xff]  ;;  %v833_v42 = vld [vmem:[%s1115_s2 + $0x148] sm:$0xff]  }
   0xe   :  { %750 = vmatprep.subr.bf16.mxu1 %v812_v13  ;;  %v28_v36 = vpack.c.bf16 %v22_v33, %v22_v33  ;;  %v27_v39 = vpack.c.bf16 %v21_v38, %v21_v38  ;;  %v834_v43 = vld [vmem:[%s1115_s2 + $0x108] sm:$0xff]   ;;  %v835_v44 = vld [vmem:[%s1115_s2 + $0x150] sm:$0xff]   ;;  %v837_v46 = vld [vmem:[%s1115_s2 + $0x158] sm:$0xff]  }
   0xf   :  { %v836_v45 = vld [vmem:[%s1115_s2 + $0x110] sm:$0xff]   ;;  %v838_v47 = vld [vmem:[%s1115_s2 + $0x118] sm:$0xff]   ;;  %v839_v48 = vld [vmem:[%s1115_s2 + $0x160] sm:$0xff]  }
  0x10   :  { %729 = vmatpush3.bf16.msra.mxu0 %v813_v14  ;;  %487 = vmatprep.mubr.bf16.mxu1 %v28_v36  ;;  %v24_v49 = vld [vmem:[%s1114_s1 + $0x28] sm:$0xff]  ;;  %v840_v50 = vld [vmem:[%s1115_s2 + $0x120] sm:$0xff]  }
  0x11   :  { %751 = vmatpush3.bf16.msra.mxu1 %v814_v15  ;;  %730 = vmatprep.subr.bf16.mxu0 %v815_v16  ;;  %v30_v51 = vpack.c.bf16 %v24_v49, %v24_v49 }
  0x12   :  { %752 = vmatprep.subr.bf16.mxu1 %v816_v17 }
  0x14   :  { %731 = vmatpush3.bf16.msra.mxu0 %v817_v18 }
  0x15   :  { %753 = vmatpush3.bf16.msra.mxu1 %v818_v19  ;;  %732 = vmatprep.subr.bf16.mxu0 %v819_v20 }
  0x16   :  { %754 = vmatprep.subr.bf16.mxu1 %v820_v21 }
  0x18   :  { %733 = vmatpush3.bf16.msra.mxu0 %v821_v22 }
  0x19   :  { %755 = vmatpush3.bf16.msra.mxu1 %v822_v23  ;;  %734 = vmatprep.subr.bf16.mxu0 %v823_v24 }
  0x1a   :  { %756 = vmatprep.subr.bf16.mxu1 %v824_v25 }
  0x1c   :  { %735 = vmatpush3.bf16.msra.mxu0 %v825_v26 }
  0x1d   :  { %757 = vmatpush3.bf16.msra.mxu1 %v826_v27  ;;  %736 = vmatprep.subr.bf16.mxu0 %v827_v28 }
  0x1e   :  { %758 = vmatprep.subr.bf16.mxu1 %v828_v29 }
  0x20   :  { %737 = vmatpush3.bf16.msra.mxu0 %v829_v30 }
  0x21   :  { %759 = vmatpush3.bf16.msra.mxu1 %v830_v31  ;;  %766 = vmatprep.subr.bf16.mxu0 %v831_v40 }
  0x23   :  { %448 = vmatmul.mubr.bf16.vlgmr.msra.gmra.mrb[0].mxu0 %v25_v37 }
  0x24   :  { %488 = vmatmul.mubr.bf16.vlgmr.msra.gmra.mrb[0].mxu1 %v27_v39  ;;  %767 = vmatpush3.bf16.msra.mxu0 %v832_v41 }
  0x25   :  { %768 = vmatprep.subr.bf16.mxu0 %v833_v42 }
  0x28   :  { %769 = vmatpush3.bf16.msra.mxu0 %v834_v43 }
  0x29   :  { %770 = vmatprep.subr.bf16.mxu0 %v835_v44 }
  0x2c   :  { %771 = vmatpush3.bf16.msra.mxu0 %v836_v45 }
  0x2d   :  { %772 = vmatprep.subr.bf16.mxu0 %v837_v46 }
  0x30   :  { %773 = vmatpush3.bf16.msra.mxu0 %v838_v47 }
  0x31   :  { %11 = vsyncpa [#allocation5], 0  ;;  %774 = vmatprep.subr.bf16.mxu0 %v839_v48  ;;  %v841_v52 = vld [vmem:[%s1115_s2 + $0x168] sm:$0xff]   ;;  %527 = vmatprep.mubr.bf16.mxu0 %v30_v51  ;;  %v843_v54 = vld [vmem:[%s1115_s2 + $0x170] sm:$0xff]   ;;  %v895_v60 = vmov 0.0   ;;  %vm896_vm0 = vmmov 0  }
  0x32   :  { %v842_v53 = vld [vmem:[%s1115_s2 + $0x128] sm:$0xff]   ;;  %v844_v55 = vld [vmem:[%s1115_s2 + $0x130] sm:$0xff]   ;;  %v845_v56 = vld [vmem:[%s1115_s2 + $0x178] sm:$0xff]   ;;  %790 = vmatprep.subr.mxu1 %v895_v60  ;;  %792 = vmatprep.mubr.msk.f32.mxu1 %vm896_vm0, %v895_v60  ;;  %s897_s19 = smov [#allocation4]  }
  0x33   :  { %v846_v57 = vld [vmem:[%s1115_s2 + $0x138] sm:$0xff]   ;;  %v23_v58 = vld [vmem:[%s1114_s1 + $0x20] sm:$0xff]  ;;  %s662_s20 = sshll.u32 %s897_s19, 4  ;;  %s663_s20 = int_to_ptr.vmem [resolvable:$true] %s662_s20 }
  0x34   :  { %775 = vmatpush3.bf16.msra.mxu0 %v840_v50  ;;  %v29_v59 = vpack.c.bf16 %v23_v58, %v23_v58  ;;  %v551_v14 = vld [vmem:[%s1113_s0] sm:$0xff]  ;;  %s847_s21 = scalar_lea.vmem %s663_s20, 128  ;;  %p852_p1 = scmp.lt.s32.totalorder %s663_s20, %s663_s20 }
  0x35   :  { %776 = vmatprep.subr.bf16.mxu0 %v841_v52  ;;  %p848_p0 = scmp.ne.s32.totalorder %s663_s20, %s847_s21  ;;  %p853_p2 = scmp.lt.s32.totalorder %s847_s21, %s847_s21 }
  0x37   :  { %p854_p3 = por %p853_p2, %p852_p1 }
  0x38   :  { %777 = vmatpush3.bf16.msra.mxu0 %v842_v53 }
  0x39   :  { %778 = vmatprep.subr.bf16.mxu0 %v843_v54  ;;  %p855_p4 = pnand %p854_p3, %p848_p0 }
  0x3c   :  { %779 = vmatpush3.bf16.msra.mxu0 %v844_v55 }
  0x3d   :  { %780 = vmatprep.subr.bf16.mxu0 %v845_v56 }
  0x40   :  { %781 = vmatpush3.bf16.msra.mxu0 %v846_v57 }
  0x43   :  { %528 = vmatmul.mubr.bf16.vlgmr.msra.gmra.mrb[4].mxu0 %v29_v59 }
  0xf6   :  { %v738_v61 = vpop.f32.mrb[0].mxu0 }
  0xf7   :  { %v760_v62 = vpop.f32.mrb[0].mxu1  ;;  %v739_v63 = vpop.f32.mrb[1].mxu0 }
  0xf8   :  { %v761_v0 = vpop.f32.mrb[1].mxu1  ;;  %v740_v1 = vadd.f32 %v739_v63, %v738_v61  ;;  %v741_v3 = vpop.f32.mrb[2].mxu0 }
  0xf9   :  { %v762_v2 = vadd.f32 %v761_v0, %v760_v62  ;;  %v763_v4 = vpop.f32.mrb[2].mxu1  ;;  %v742_v5 = vpop.f32.mrb[3].mxu0 }
  0xfa   :  { %v764_v6 = vpop.f32.mrb[3].mxu1 }
  0xfb   :  { %v490_v7 = vadd.f32 %v762_v2, %v740_v1 }
 0x116   :  { %v782_v8 = vpop.f32.mrb[4].mxu0 }
 0x117   :  { %v783_v9 = vpop.f32.mrb[5].mxu0 }
 0x118   :  { %v784_v10 = vadd.f32 %v783_v9, %v782_v8  ;;  %v785_v11 = vpop.f32.mrb[6].mxu0 }
 0x119   :  { %v786_v12 = vpop.f32.mrb[7].mxu0 }
 0x11a   :  { %v530_v13 = vadd.f32 %v784_v10, %v490_v7 }
 0x11c   :  { %539 = vst [vmem:[#allocation4] sm:$0xff] %v530_v13  ;;  %791 = vmatpush3.xpose.msra.mxu1 %v530_v13 }
 0x11f   :  { %793 = vmatmul.mubr.f32.vlgmr.msra.gmra.mrb[4].mxu1 %v551_v14 }
 0x120   :  { %858 = shalt.err (!%p855_p4)
}
 0x121   :  { %s859_s24 = scalar_lea.hbm %s1117_s4, 128 }
 0x122   :  { %p860_p5 = scmp.ne.s32.totalorder %s1117_s4, %s859_s24  ;;  %p863_p6 = scmp.lt.u32.totalorder %s859_s24, %s1117_s4 }
 0x124   :  { %p865_p7 = pnand %p863_p6, %p860_p5 }
 0x126   :  { %868 = shalt.err (!%p865_p7)
}
 0x127   :  { %665 = dma.vmem_to_hbm [thread:$0]  %s663_s20, 128, %s1117_s4, [#allocation5]   ;;  %vm622_vm1 = vcmask 64512   ;;  %v630_v21 = vlaneseq  ;;  %vm644_vm5 = vcmask 57344  }
 0x128   :  { %s898_s4 = smov [#allocation2]  }
 0x129   :  { %v631_v24 = vshrl.u32 %v630_v21, 7  ;;  %s652_s30 = sshll.u32 %s898_s4, 4  ;;  %s653_s30 = int_to_ptr.vmem [resolvable:$true] %s652_s30 }
 0x12a   :  { %s869_s5 = scalar_lea.vmem %s653_s30, 16  ;;  %s873_s6 = scalar_lea.vmem %s653_s30, 32 }
 0x12b   :  { %p870_p8 = scmp.ne.s32.totalorder %s653_s30, %s869_s5  ;;  %p874_p9 = scmp.lt.s32.totalorder %s653_s30, %s653_s30 }
 0x12c   :  { %p875_p10 = scmp.lt.s32.totalorder %s873_s6, %s869_s5 }
 0x12e   :  { %p876_p11 = por %p875_p10, %p874_p9 }
 0x130   :  { %p877_p12 = pnand %p876_p11, %p870_p8 }
 0x1f2   :  { %v618_v15 = vpop.f32.mrb[4].mxu1 }
 0x1f3   :  { %v623_v16 = vsel %vm622_vm1, %v618_v15, -inf  ;;  %v794_v17 = vpop.f32.mrb[5].mxu1 }
 0x1f4   :  { %v624_v18 = vrot.slane %v623_v16, 4 }
 0x1f6   :  { %v625_v19 = vmax.f32 %v623_v16, %v624_v18 }
 0x1f8   :  { %v626_v20 = vrot.slane %v625_v19, 2 }
 0x1fa   :  { %v627_v22 = vmax.f32 %v625_v19, %v626_v20 }
 0x1fc   :  { %v628_v23 = vrot.slane %v627_v22, 1 }
 0x1fe   :  { %v629_v25 = vmax.f32 %v627_v22, %v628_v23 }
 0x200   :  { %vm632_vm2 = vcmp.eq.f32.partialorder %v618_v15, %v629_v25 }
 0x201   :  { %v633_v26 = vsel %vm632_vm2, %v631_v24, 2147483647 }
 0x202   :  { %v634_v27 = vsel %vm622_vm1, %v633_v26, 2147483647 }
 0x203   :  { %v635_v28 = vrot.slane %v634_v27, 4 }
 0x205   :  { %vm636_vm3 = vcmp.lt.s32.totalorder %v634_v27, %v635_v28 }
 0x206   :  { %v637_v29 = vsel %vm636_vm3, %v634_v27, %v635_v28 }
 0x207   :  { %v638_v30 = vrot.slane %v637_v29, 2 }
 0x209   :  { %vm639_vm4 = vcmp.lt.s32.totalorder %v637_v29, %v638_v30 }
 0x20a   :  { %v640_v31 = vsel %vm639_vm4, %v637_v29, %v638_v30 }
 0x20b   :  { %v641_v32 = vrot.slane %v640_v31, 1 }
 0x20d   :  { %vm642_vm6 = vcmp.lt.s32.totalorder %v640_v31, %v641_v32 }
 0x20e   :  { %v643_v33 = vsel %vm642_vm6, %v640_v31, %v641_v32 }
 0x20f   :  { %645 = vst.msk [vmem:[#allocation2] sm:$0x1] %vm644_vm5, %v643_v33 }
 0x210   :  { %880 = shalt.err (!%p877_p12)
}
 0x211   :  { %s881_s9 = scalar_lea.hbm %s1116_s3, 16 }
 0x212   :  { %p882_p13 = scmp.ne.s32.totalorder %s1116_s3, %s881_s9  ;;  %p885_p0 = scmp.lt.u32.totalorder %s881_s9, %s1116_s3 }
 0x214   :  { %p887_p1 = pnand %p885_p0, %p882_p13 }
 0x216   :  { %890 = shalt.err (!%p887_p1)
}
 0x217   :  { %655 = dma.vmem_to_hbm [thread:$0]  %s653_s30, 16, %s1116_s3, [#allocation3]  }
 0x218   :  { %891 = dma.done.wait [#allocation3], 16  }
 0x219   :  { %892 = vsyncadd [#allocation3], 4294967280 }
 0x21a   :  { %893 = dma.done.wait [#allocation5], 128  }
 0x21b   :  { %894 = vsyncadd [#allocation5], 4294967168 }
 0x21c   :  { %672 = vsyncpa [#allocation3], 1 }
 0x21d   :  { %673 = vsyncpa [#allocation5], 1 }

</bundles_post_ra>
